<compile_context>
chip_gen: v6e
topology: v6e:2x2x1
jax: 0.10.0
libtpu: 0.0.40
codegen_flags: <defaults>
</compile_context>

<pallas_src>
import math

import jax
import jax.numpy as jnp
from jax.experimental import pallas as pl
from jax.experimental.pallas import tpu as pltpu


def _round_up(v, m):
    return (v + m - 1) // m * m


def _sublane_tile(itemsize):
    # f32 -> 8, bf16 -> 16, int8 -> 32 (sub-32-bit dtypes pack along sublanes).
    return 8 * max(1, 4 // max(1, itemsize))


def _padded_block_bytes(shape, itemsize):
    """VMEM footprint of one block, padded to the dtype's vreg tile."""
    shape = list(shape)
    if len(shape) >= 2:
        shape[-1] = _round_up(shape[-1], 128)
        shape[-2] = _round_up(shape[-2], _sublane_tile(itemsize))
    else:
        shape[-1] = _round_up(shape[-1], 128)
    n = 1
    for s in shape:
        n *= s
    return n * itemsize


def _pick_row_tile(num_rows, row_bytes, target_bytes=2 << 20):
    """Largest row tile dividing num_rows that is a multiple of 8 (or the full
    extent, which is always BlockSpec-legal) and keeps one x block <= target."""
    cands = [t for t in range(num_rows, 0, -1)
             if num_rows % t == 0 and (t % 8 == 0 or t == num_rows)]
    for t in cands:
        if t * row_bytes <= target_bytes:
            return t
    return cands[-1]


def _affine_kernel(x_ref, a_ref, t_ref, dlp_ref, lp_ref, xo_ref, lo_ref):
    """Single fused affine update of one point tile.

    x_ref   : [1, TR, P*D]  point tile (rows = groups of P points; lanes are
                            point-major / dim-minor, exactly the [B,N,D] order)
    a_ref   : [1, 1,  P*D]  composed per-(batch, dim) scale, tiled along lanes
    t_ref   : [1, 1,  P*D]  composed per-(batch, dim) shift, tiled along lanes
    dlp_ref : [1, 1, 1]     total per-batch log-det correction
    lp_ref  : [1, TR, P]    log p(x) tile
    """
    x = x_ref[...].astype(jnp.float32)
    xo_ref[...] = (x * a_ref[...] + t_ref[...]).astype(xo_ref.dtype)
    lo_ref[...] = lp_ref[...] + dlp_ref[...]


class SequentialFlowPallas:
    """Pallas equivalent of pointflow.cnf.SequentialFlow over synthetic layers."""

    def __init__(self, num_layers, dim, cdim, key):
        kw, kb = jax.random.split(key, 2)
        # Per-layer conditioning weights: [L, Cd, 2D] and [L, 1, 2D].
        self.W = 0.1 * jax.random.normal(kw, (num_layers, cdim, 2 * dim),
                                         jnp.float32)
        self.b = 0.1 * jax.random.normal(kb, (num_layers, 1, 2 * dim),
                                         jnp.float32)
        self.num_layers = num_layers
        self.dim = dim
        self.cdim = cdim

    def _composed_affine(self, c, inds, reverse):
        """Fold the selected layer chain into one affine per (batch, dim).

        Returns A [B, D] (scale), T [B, D] (shift), dlp [B] (logpx delta), all
        computed on tiny tensors in the wrapper (no per-tile recompute).
        """
        D = self.dim
        idx = jnp.asarray(inds, jnp.int32)
        W_sel = self.W[idx]                                   # [L, Cd, 2D]
        b_sel = self.b[idx, 0]                                # [L, 2D]
        h = (jnp.einsum('bc,lcd->lbd', c.astype(jnp.float32),
                        W_sel.astype(jnp.float32))
             + b_sel[:, None, :])                             # [L, B, 2D]
        s, t = h[..., :D], h[..., D:]
        lg = jax.nn.log_sigmoid(s)                            # [L, B, D]
        if reverse:
            a = jnp.exp(-lg)                                  # 1 / gate
            bb = -t * a
            dlp_l = jnp.sum(lg, axis=-1)                      # [L, B]
        else:
            a = jnp.exp(lg)                                   # gate
            bb = t
            dlp_l = -jnp.sum(lg, axis=-1)
        B = c.shape[0]
        A = jnp.ones((B, D), jnp.float32)
        T = jnp.zeros((B, D), jnp.float32)
        for l in range(len(inds)):                            # application order
            T = T * a[l] + bb[l]
            A = A * a[l]
        return A, T, jnp.sum(dlp_l, axis=0)

    def __call__(self, x, c, logpx=None, reverse=False, inds=None,
                 integration_times=None):
        # TODO(synk): `integration_times` (the CNF ODE-solver time grid) has no
        # effect on these synthetic affine layers; it is accepted and ignored.
        if inds is None:
            inds = (range(self.num_layers - 1, -1, -1) if reverse
                    else range(self.num_layers))
        inds = [int(i) for i in inds]

        B, N, D = x.shape
        assert D == self.dim and c.shape == (B, self.cdim)
        return_lp = logpx is not None
        lp_in = (jnp.zeros((B, N), jnp.float32) if logpx is None
                 else jnp.reshape(logpx, (B, N)).astype(jnp.float32))

        if len(inds) == 0:                    # empty layer chain -> identity
            return x if not return_lp else (x, lp_in[..., None])

        # Whole layer chain as a single affine (tiny wrapper-side compute).
        A, T, dlp = self._composed_affine(c, inds, bool(reverse))

        # Transpose-free lane-dense layout: pure reshape [B,N,D]->[B, N//P, P*D].
        itemsize = jnp.dtype(x.dtype).itemsize
        P = 128 // math.gcd(D, 128)           # smallest P with (P*D) % 128 == 0
        if N % P != 0:
            P = N                             # fallback: one row group per batch
        R = N // P
        PD = P * D

        tr = _pick_row_tile(R, PD * itemsize)
        grid = (B, R // tr)

        x3 = jnp.reshape(x, (B, R, PD))
        lp3 = jnp.reshape(lp_in, (B, R, P))
        # Scale/shift as one periodic lane row per batch (tile of [a0..aD-1]).
        a_row = jnp.tile(A, (1, P)).reshape(B, 1, PD)
        t_row = jnp.tile(T, (1, P)).reshape(B, 1, PD)
        dlp3 = dlp.reshape(B, 1, 1)

        # VMEM budget: double-buffered in/out blocks, dtype-aware padding.
        blocks = [((1, tr, PD), itemsize), ((1, 1, PD), 4), ((1, 1, PD), 4),
                  ((1, 1, 1), 4), ((1, tr, P), 4),
                  ((1, tr, PD), itemsize), ((1, tr, P), 4)]
        est = 2 * sum(_padded_block_bytes(s, isz) for s, isz in blocks)
        vmem_limit = int(min(max(est + (1 << 20), 8 << 20), 32 << 20))

        cost = pl.CostEstimate(
            flops=2 * B * N * D + B * N,
            transcendentals=0,
            bytes_accessed=(2 * B * N * D * itemsize + 2 * B * N * 4
                            + 2 * B * PD * 4 + B * 4))

        x_out3, lp_out3 = pl.pallas_call(
            _affine_kernel,
            out_shape=(jax.ShapeDtypeStruct((B, R, PD), x.dtype),
                       jax.ShapeDtypeStruct((B, R, P), jnp.float32)),
            grid=grid,
            in_specs=[
                pl.BlockSpec((1, tr, PD), lambda b, j: (b, j, 0)),
                pl.BlockSpec((1, 1, PD), lambda b, j: (b, 0, 0)),
                pl.BlockSpec((1, 1, PD), lambda b, j: (b, 0, 0)),
                pl.BlockSpec((1, 1, 1), lambda b, j: (b, 0, 0)),
                pl.BlockSpec((1, tr, P), lambda b, j: (b, j, 0)),
            ],
            out_specs=(pl.BlockSpec((1, tr, PD), lambda b, j: (b, j, 0)),
                       pl.BlockSpec((1, tr, P), lambda b, j: (b, j, 0))),
            # Reuse the x / logpx HBM buffers for the outputs (in-place update).
            input_output_aliases={0: 0, 4: 1},
            compiler_params=pltpu.CompilerParams(
                dimension_semantics=("parallel", "parallel"),
                vmem_limit_bytes=vmem_limit),
            cost_estimate=cost,
        )(x3, a_row, t_row, dlp3, lp3)

        x_out = jnp.reshape(x_out3, (B, N, D))
        if not return_lp:
            return x_out
        return x_out, jnp.reshape(lp_out3, (B, N, 1))


def _reference(W, b, x, c, logpx, reverse, inds):
    """Pure-JAX reference of the same layer chain (naive sequential form)."""
    D = x.shape[-1]
    x = x.astype(jnp.float32)
    lp = logpx.astype(jnp.float32)
    for l in inds:
        h = c @ W[l] + b[l, 0]
        gate = jax.nn.sigmoid(h[:, :D])
        shift = h[:, D:]
        logdet = jnp.sum(jnp.log(gate), axis=-1)[:, None, None]
        if reverse:
            x = (x - shift[:, None, :]) / gate[:, None, :]
            lp = lp + logdet
        else:
            x = x * gate[:, None, :] + shift[:, None, :]
            lp = lp - logdet
    return x, lp


if __name__ == "__main__":
    key = jax.random.PRNGKey(0)
    k_x, k_c, k_w = jax.random.split(key, 3)

    # PointFlow-like shapes: B point clouds of N points with D=3 features.
    B, N, D, Cdim, L = 2, 1024, 3, 16, 4
    x = jax.random.normal(k_x, (B, N, D), jnp.float32)
    c = jax.random.normal(k_c, (B, Cdim), jnp.float32)
    logpx = jnp.zeros((B, N, 1), jnp.float32)

    flow = SequentialFlowPallas(num_layers=L, dim=D, cdim=Cdim, key=k_w)

    # Forward pass with logpx.
    z, logpz = flow(x, c, logpx=logpx, reverse=False)
    jax.block_until_ready((z, logpz))
    z_ref, logpz_ref = _reference(flow.W, flow.b, x, c, logpx,
                                  reverse=False, inds=range(L))
    assert jnp.allclose(z, z_ref, atol=1e-4, rtol=1e-4)
    assert jnp.allclose(logpz, logpz_ref, atol=1e-4, rtol=1e-4)

    # Reverse pass with logpx=None (returns only x); must invert the forward.
    x_rec = flow(z, c, logpx=None, reverse=True)
    jax.block_until_ready(x_rec)
    assert jnp.allclose(x_rec, x, atol=1e-3, rtol=1e-3)

    # Explicit inds subset, forward order.
    z_sub, lp_sub = flow(x, c, logpx=logpx, reverse=False, inds=[0, 2])
    jax.block_until_ready((z_sub, lp_sub))
    z_sub_ref, lp_sub_ref = _reference(flow.W, flow.b, x, c, logpx,
                                       reverse=False, inds=[0, 2])
    assert jnp.allclose(z_sub, z_sub_ref, atol=1e-4, rtol=1e-4)
    assert jnp.allclose(lp_sub, lp_sub_ref, atol=1e-4, rtol=1e-4)

    print("KERNEL_OK")
</pallas_src>

<mosaic_0001>
module attributes {stable_mosaic.version = 11 : i64} {
  func.func @_affine_kernel(%arg0: i32, %arg1: i32, %arg2: memref<1x8x384xf32, #tpu.memory_space<vmem>>, %arg3: memref<1x1x384xf32, #tpu.memory_space<vmem>>, %arg4: memref<1x1x384xf32, #tpu.memory_space<vmem>>, %arg5: memref<1x1x1xf32, #tpu.memory_space<vmem>>, %arg6: memref<1x8x128xf32, #tpu.memory_space<vmem>>, %arg7: memref<1x8x384xf32, #tpu.memory_space<vmem>>, %arg8: memref<1x8x128xf32, #tpu.memory_space<vmem>>) attributes {dimension_semantics = [#tpu.dimension_semantics<parallel>, #tpu.dimension_semantics<parallel>], iteration_bounds = array<i64: 2, 1>, scalar_prefetch = 0 : i64, scratch_operands = 0 : i64, tpu.core_type = #tpu.core_type<tc>, window_params = [{transform_indices = @transform_0, window_bounds = array<i64: 1, 8, 384>}, {transform_indices = @transform_1, window_bounds = array<i64: 1, 1, 384>}, {transform_indices = @transform_2, window_bounds = array<i64: 1, 1, 384>}, {transform_indices = @transform_3, window_bounds = array<i64: 1, 1, 1>}, {transform_indices = @transform_4, window_bounds = array<i64: 1, 8, 128>}, {transform_indices = @transform_5, window_bounds = array<i64: 1, 8, 384>}, {transform_indices = @transform_6, window_bounds = array<i64: 1, 8, 128>}]} {
    %c0 = arith.constant 0 : index
    %c0_0 = arith.constant 0 : index
    %c0_1 = arith.constant 0 : index
    %0 = vector.load %arg2[%c0, %c0_0, %c0_1] : memref<1x8x384xf32, #tpu.memory_space<vmem>>, vector<1x8x384xf32>
    %c0_2 = arith.constant 0 : index
    %c0_3 = arith.constant 0 : index
    %c0_4 = arith.constant 0 : index
    %1 = vector.load %arg3[%c0_2, %c0_3, %c0_4] : memref<1x1x384xf32, #tpu.memory_space<vmem>>, vector<1x1x384xf32>
    %2 = vector.broadcast %1 : vector<1x1x384xf32> to vector<1x8x384xf32>
    %3 = arith.mulf %0, %2 : vector<1x8x384xf32>
    %c0_5 = arith.constant 0 : index
    %c0_6 = arith.constant 0 : index
    %c0_7 = arith.constant 0 : index
    %4 = vector.load %arg4[%c0_5, %c0_6, %c0_7] : memref<1x1x384xf32, #tpu.memory_space<vmem>>, vector<1x1x384xf32>
    %5 = vector.broadcast %4 : vector<1x1x384xf32> to vector<1x8x384xf32>
    %6 = arith.addf %3, %5 : vector<1x8x384xf32>
    %c0_8 = arith.constant 0 : index
    %c0_9 = arith.constant 0 : index
    %c0_10 = arith.constant 0 : index
    %7 = vector.load %arg7[%c0_8, %c0_9, %c0_10] : memref<1x8x384xf32, #tpu.memory_space<vmem>>, vector<1x8x384xf32>
    tpu.vector_store %arg7[%c0_8, %c0_9, %c0_10], %6 {strides = array<i32>} : memref<1x8x384xf32, #tpu.memory_space<vmem>>, vector<1x8x384xf32>,
    %c0_11 = arith.constant 0 : index
    %c0_12 = arith.constant 0 : index
    %c0_13 = arith.constant 0 : index
    %8 = vector.load %arg6[%c0_11, %c0_12, %c0_13] : memref<1x8x128xf32, #tpu.memory_space<vmem>>, vector<1x8x128xf32>
    %c0_14 = arith.constant 0 : index
    %c0_15 = arith.constant 0 : index
    %c0_16 = arith.constant 0 : index
    %9 = vector.load %arg5[%c0_14, %c0_15, %c0_16] : memref<1x1x1xf32, #tpu.memory_space<vmem>>, vector<1x1x1xf32>
    %10 = vector.broadcast %9 : vector<1x1x1xf32> to vector<1x8x128xf32>
    %11 = arith.addf %8, %10 : vector<1x8x128xf32>
    %c0_17 = arith.constant 0 : index
    %c0_18 = arith.constant 0 : index
    %c0_19 = arith.constant 0 : index
    %12 = vector.load %arg8[%c0_17, %c0_18, %c0_19] : memref<1x8x128xf32, #tpu.memory_space<vmem>>, vector<1x8x128xf32>
    tpu.vector_store %arg8[%c0_17, %c0_18, %c0_19], %11 {strides = array<i32>} : memref<1x8x128xf32, #tpu.memory_space<vmem>>, vector<1x8x128xf32>,
    return
  }
  func.func @transform_0(%arg0: i32, %arg1: i32) -> (i32, i32, i32) {
    %c0_i32 = arith.constant 0 : i32
    %c0_i32_0 = arith.constant 0 : i32
    return %arg0, %arg1, %c0_i32 : i32, i32, i32
  }
  func.func @transform_1(%arg0: i32, %arg1: i32) -> (i32, i32, i32) {
    %c0_i32 = arith.constant 0 : i32
    %c0_i32_0 = arith.constant 0 : i32
    %c0_i32_1 = arith.constant 0 : i32
    return %arg0, %c0_i32, %c0_i32_0 : i32, i32, i32
  }
  func.func @transform_2(%arg0: i32, %arg1: i32) -> (i32, i32, i32) {
    %c0_i32 = arith.constant 0 : i32
    %c0_i32_0 = arith.constant 0 : i32
    %c0_i32_1 = arith.constant 0 : i32
    return %arg0, %c0_i32, %c0_i32_0 : i32, i32, i32
  }
  func.func @transform_3(%arg0: i32, %arg1: i32) -> (i32, i32, i32) {
    %c0_i32 = arith.constant 0 : i32
    %c0_i32_0 = arith.constant 0 : i32
    %c0_i32_1 = arith.constant 0 : i32
    return %arg0, %c0_i32, %c0_i32_0 : i32, i32, i32
  }
  func.func @transform_4(%arg0: i32, %arg1: i32) -> (i32, i32, i32) {
    %c0_i32 = arith.constant 0 : i32
    %c0_i32_0 = arith.constant 0 : i32
    return %arg0, %arg1, %c0_i32 : i32, i32, i32
  }
  func.func @transform_5(%arg0: i32, %arg1: i32) -> (i32, i32, i32) {
    %c0_i32 = arith.constant 0 : i32
    %c0_i32_0 = arith.constant 0 : i32
    return %arg0, %arg1, %c0_i32 : i32, i32, i32
  }
  func.func @transform_6(%arg0: i32, %arg1: i32) -> (i32, i32, i32) {
    %c0_i32 = arith.constant 0 : i32
    %c0_i32_0 = arith.constant 0 : i32
    return %arg0, %arg1, %c0_i32 : i32, i32, i32
  }
}

</mosaic_0001>

<bundles_post_ra>
// kernel: tpu_custom_call.1
= control target key start
LH: loop header
LB: loop body
LE: loop exit
PB: predicated region body
PF: predicated region fallthrough
CT: control target
= control target key end

     0   :  { %s1176_s0 = inlined_call_operand.hbm [shape: f32[2,8,384], index: 0, kind: input, shape index: {}, may-alias: {0,5}]   ;;  %s1177_s1 = inlined_call_operand.vmem [shape: f32[2,1,384], index: 1, kind: input, shape index: {}]   ;;  %s1178_s2 = inlined_call_operand.vmem [shape: f32[2,1,384], index: 2, kind: input, shape index: {}]   ;;  %s1179_s3 = inlined_call_operand.vmem [shape: f32[2,1,1], index: 3, kind: input, shape index: {}]   ;;  %s1180_s4 = inlined_call_operand.hbm [shape: f32[2,8,128], index: 4, kind: input, shape index: {}, may-alias: {4,6}]   ;;  %s1181_s5 = inlined_call_operand.hbm [shape: f32[2,8,384], index: 5, kind: output, shape index: {0}, may-alias: {0,5}]   ;;  %s1182_s6 = inlined_call_operand.hbm [shape: f32[2,8,128], index: 6, kind: output, shape index: {1}, may-alias: {4,6}]  }
   0x1   :  { %1184 = sst [smem:[#allocation15_spill]] %s1176_s0 }
   0x2   :  { %12 = vsyncpa [#allocation3], 0 }
   0x3   :  { %14 = vsyncpa [#allocation3 + $0x1], 0 }
   0x4   :  { %15 = vsyncpa [#allocation6], 0 }
   0x5   :  { %17 = vsyncpa [#allocation6 + $0x1], 0 }
   0x6   :  { %18 = vsyncpa [#allocation4], 0 }
   0x7   :  { %20 = vsyncpa [#allocation4 + $0x1], 0 }
   0x8   :  { %21 = vsyncpa [#allocation9], 0 }
   0x9   :  { %23 = vsyncpa [#allocation9 + $0x1], 0  ;;  %s963_s21 = smov 0   ;;  %s965_s22 = smov 0  }
   0xa   :  { %s967_s23 = smov 0   ;;  %s969_s24 = smov 0  }
   0xb   :  { %s971_s25 = smov 0   ;;  %s973_s26 = smov 0  }
   0xc LB: > { %s656_s27 = sadd.s32 4294967295, %s921_s26   ;;  %s657_s28 = sadd.s32 4294967294, %s921_s26   ;;  %s921_s26 = sphi %s973_s26, %s29_s26   ;;  %s917_s25 = sphi %s971_s25, %s1199_s25   ;;  %s913_s24 = sphi %s969_s24, %s1198_s24   ;;  %s909_s23 = sphi %s967_s23, %s1197_s23   ;;  %s905_s22 = sphi %s965_s22, %s1196_s22   ;;  %s901_s21 = sphi %s963_s21, %s1195_s21  }
   0xd   : > { %s41_s29 = sadd.s32 1, %s917_s25  ;;  %s50_s30 = sadd.s32 1, %s909_s23 }
   0xe   : > { %p43_p0 = scmp.ge.s32.totalorder %s41_s29, 2  ;;  %p57_p1 = scmp.ne.s32.totalorder %s909_s23, %s905_s22 }
   0xf   : > { %p58_p2 = scmp.eq.s32.totalorder %s921_s26, 0  ;;  %p63_p3 = scmp.ne.s32.totalorder %s905_s22, %s901_s21 }
  0x10   : > { %s1201_s29 = smov (%p43_p0, %s41_s29), 0  ;;  %p64_p5 = scmp.eq.s32.totalorder %s656_s27, 0 }
  0x11   : > { %1185 = sst [smem:[#allocation14_spill]] %s1201_s29  ;;  %p1004_p4 = por %p58_p2, %p57_p1 }
  0x12   : > { %s45_s8 = ssub.s32 %s917_s25, %s1201_s29  ;;  %p195_p6 = scmp.eq.s32.totalorder %s656_s27, 1 }
  0x13   : > { %p48_p7 = scmp.eq.s32.totalorder %s45_s8, 0  ;;  %p1010_p8 = por %p64_p5, %p63_p3 }
  0x14   : > { %p1014_p9 = por %p195_p6, %p57_p1  ;;  %p201_p10 = scmp.eq.s32.totalorder %s657_s28, 1 }
  0x15   : > { %s1019_s11 = scalar_select %p48_p7, %s909_s23, %s50_s30  }
  0x16   : > { %p1021_p11 = por %p201_p10, %p63_p3  ;;  %p699_p13 = scmp.lt.s32.totalorder %s921_s26, 2 }
  0x17   : > { %s1028_s13 = sand.u32 1, %s909_s23   ;;  %s673_s15 = smul.u32 384, %s917_s25 }
  0x18   : > { %s672_s14 = smul.u32 24, %s1028_s13  ;;  %p1034_p0 = pnand %p699_p13, %p1004_p4 }
  0x19   : > { %p663_p1 = scmp.ge.s32.totalorder %s921_s26, 1  ;;  %s1191_s0 = sld [smem:[#allocation15_spill]] }
  0x1a   : > { %s253_s20 = scalar_lea.vmem [#allocation2], %s672_s14  ;;  %s250_s28 = scalar_lea.sflag [#allocation3], %s1028_s13 }
  0x1b   : > { %s263_s27 = sshll.u32 %s253_s20, 4  ;;  %p753_p2 = pneg %p1034_p0  ;;  %s264_s27 = int_to_ptr.vmem [resolvable:$true] %s263_s27 }
  0x1c   : > { %s764_s30 = scalar_lea.vmem %s264_s27, 384  ;;  %s923_s7 = smov [#allocation2]  }
  0x1d   : > { %p765_p3 = scmp.ne.s32.totalorder %s264_s27, %s764_s30  ;;  %s769_s8 = sshll.u32 %s923_s7, 4  ;;  %s770_s8 = int_to_ptr.vmem [resolvable:$false] %s769_s8 }
  0x1e   : > { %s771_s29 = scalar_lea.vmem %s770_s8, 768  ;;  %p772_p6 = scmp.lt.s32.totalorder %s264_s27, %s770_s8 }
  0x1f   : > { %s261_s19 = scalar_lea.hbm %s1191_s0, %s673_s15  ;;  %p767_p4 = pnand %p765_p3, %p753_p2 }
  0x20   : > { %p773_p7 = scmp.lt.s32.totalorder %s771_s29, %s764_s30 }
  0x21   : > { %p768_p5 = pneg %p767_p4 }
  0x22   : > { %p774_p10 = por %p773_p7, %p772_p6 }
  0x24   : > { %p775_p13 = pnand %p774_p10, %p768_p5 }
  0x26   : > { %778 = shalt.err (!%p775_p13)
}
  0x27   : > { %688 = dma.hbm_to_vmem [thread:$0]  (!%p1034_p0), %s261_s19, 384, %s264_s27, %s250_s28  }
  0x28   : > { %p307_p3 = scmp.lt.s32.totalorder %s921_s26, 3  ;;  %s661_s14 = sshll.u32 %s1028_s13, 3 }
  0x29   : > { %s662_s15 = sshll.u32 %s917_s25, 7  ;;  %s294_s30 = scalar_lea.vmem [#allocation5], %s661_s14 }
  0x2a   : > { %p1055_p4 = pnand %p663_p1, %p307_p3  ;;  %s300_s20 = scalar_lea.hbm %s1180_s4, %s662_s15 }
  0x2b   : > { %s302_s7 = sshll.u32 %s294_s30, 4  ;;  %s291_s8 = scalar_lea.sflag [#allocation6], %s1028_s13  ;;  %s303_s7 = int_to_ptr.vmem [resolvable:$true] %s302_s7 }
  0x2c   : > { %s792_s0 = scalar_lea.vmem %s303_s7, 128  ;;  %s924_s19 = smov [#allocation5]  }
  0x2d   : > { %p793_p5 = scmp.ne.s32.totalorder %s303_s7, %s792_s0  ;;  %s797_s27 = sshll.u32 %s924_s19, 4  ;;  %s798_s27 = int_to_ptr.vmem [resolvable:$false] %s797_s27 }
  0x2e   : > { %s799_s28 = scalar_lea.vmem %s798_s27, 256  ;;  %p800_p1 = scmp.lt.s32.totalorder %s303_s7, %s798_s27 }
  0x2f   : > { %p795_p6 = pnand %p793_p5, %p753_p2  ;;  %p801_p10 = scmp.lt.s32.totalorder %s799_s28, %s792_s0 }
  0x31   : > { %p796_p7 = pneg %p795_p6  ;;  %p802_p13 = por %p801_p10, %p800_p1 }
  0x33   : > { %p803_p3 = pnand %p802_p13, %p796_p7 }
  0x35   : > { %806 = shalt.err (!%p803_p3)
}
  0x36   : > { %691 = dma.hbm_to_vmem [thread:$0]  (!%p1034_p0), %s300_s20, 128, %s303_s7, %s291_s8  }
  0x37   : > { %311 = sbr.rel (%p1055_p4) target bundleno = 209 (0xd1), region = 40  ;;  %s1071_s13 = sand.u32 (!%p1055_p4), 1, %s905_s22  }
  0x38   : > { %s674_s14 = smul.u32 (!%p1055_p4), 24, %s1071_s13  ;;  %s314_s15 = scalar_lea.sflag (!%p1055_p4), [#allocation3], %s1071_s13 }
  0x3a   : > { %s317_s0 = scalar_lea.vmem (!%p1055_p4), [#allocation2], %s674_s14 }
  0x3c   : > { %884 = dma.done.wait (%p1010_p8), %s314_s15, 384  }
  0x3d   : > { %886 = vsyncadd (%p1010_p8), %s314_s15, 4294966912  ;;  %s664_s16 = sshll.u32 %s1071_s13, 3  ;;  %s323_s17 = scalar_lea.sflag [#allocation6], %s1071_s13 }
  0x3e   : > { %s1085_s29 = scalar_lea.vmem [#allocation5], %s664_s16 }
  0x3f   : > { %888 = dma.done.wait (%p1010_p8), %s323_s17, 128  }
  0x40   : > { %890 = vsyncadd (%p1010_p8), %s323_s17, 4294967168  ;;  %p376_p0 = scmp.lt.s32.totalorder %s913_s24, 1  ;;  %v392_v0 = vlaneseq  ;;  %v925_v1 = vmov 0   ;;  %v387_v7 = vld [vmem:[%s317_s0] sm:$0xff]  ;;  %v388_v8 = vld [vmem:[%s317_s0 + $0x8] sm:$0xff]  ;;  %s368_s30 = scalar_lea.vmem [#allocation7], %s674_s14 }
  0x41   : > { %750 = vset.pattern.permute.xlu0 %v925_v1  ;;  %v389_v9 = vld [vmem:[%s317_s0 + $0x10] sm:$0xff]  ;;  %s468_s7 = sshll.u32 %s368_s30, 4  ;;  %s447_s14 = scalar_lea.sflag [#allocation4], %s1071_s13  ;;  %s1110_s7 = int_to_ptr.vmem [resolvable:$true] %s468_s7 }
  0x42   : > { %s377_s18 = scalar_select %p376_p0, %s913_s24, 1  ;;  %v393_v2 = vshrl.u32 %v392_v0, 7 }
  0x43   : > { %s807_s19 = scalar_lea.vmem %s1110_s7, 384  ;;  %s926_s9 = smov [#allocation7]  }
  0x44   : > { %s675_s20 = smul.u32 3, %s377_s18  ;;  %s386_s8 = scalar_lea.vmem %s1179_s3, %s377_s18  ;;  %v394_v3 = vsub.s32 0, %v393_v2  ;;  %v398_v4 = vsub.s32 1, %v393_v2  ;;  %v402_v5 = vsub.s32 2, %v393_v2 }
  0x45   : > { %v666_v6 = vld [vmem:[%s386_s8] ss:$0 sm:$0xff]  ;;  %s676_s18 = smul.u32 384, %s913_s24  ;;  %p808_p8 = scmp.ne.s32.totalorder %s1110_s7, %s807_s19 }
  0x46   : > { %s379_s27 = scalar_lea.vmem %s1177_s1, %s675_s20  ;;  %s383_s17 = scalar_lea.vmem %s1178_s2, %s675_s20  ;;  %441 = vperm.xlu0 %750, %v666_v6  }
  0x47   : > { %v390_v10 = vld [vmem:[%s379_s27] sm:$0x7]  ;;  %s1108_s8 = scalar_lea.hbm %s1181_s5, %s676_s18  ;;  %p809_p2 = pnand %p808_p8, %p1014_p9 }
  0x48   : > { %v410_v11 = vld [vmem:[%s383_s17] sm:$0x7]  ;;  %v395_v12 = vrot.slane %v390_v10, %v394_v3  ;;  %v399_v13 = vrot.slane %v390_v10, %v398_v4  ;;  %v403_v14 = vrot.slane %v390_v10, %v402_v5  ;;  %s811_s27 = sshll.u32 %s926_s9, 4  ;;  %s812_s27 = int_to_ptr.vmem [resolvable:$false] %s811_s27 }
  0x49   : > { %v415_v15 = vrot.slane %v410_v11, %v394_v3  ;;  %v419_v16 = vrot.slane %v410_v11, %v398_v4  ;;  %v423_v17 = vrot.slane %v410_v11, %v402_v5  ;;  %p810_p4 = pneg %p809_p2  ;;  %s813_s28 = scalar_lea.vmem %s812_s27, 768 }
  0x4a   : > { %v407_v18 = vmul.f32 %v395_v12, %v387_v7  ;;  %v408_v19 = vmul.f32 %v399_v13, %v388_v8  ;;  %v409_v20 = vmul.f32 %v403_v14, %v389_v9  ;;  %p814_p5 = scmp.lt.s32.totalorder %s1110_s7, %s812_s27  ;;  %p815_p6 = scmp.lt.s32.totalorder %s813_s28, %s807_s19 }
  0x4c   : > { %v427_v21 = vadd.f32 %v415_v15, %v407_v18  ;;  %v428_v22 = vadd.f32 %v419_v16, %v408_v19  ;;  %v429_v23 = vadd.f32 %v423_v17, %v409_v20  ;;  %p816_p7 = por %p815_p6, %p814_p5 }
  0x4e   : > { %430 = vst [vmem:[%s368_s30] sm:$0xff] %v427_v21  ;;  %431 = vst [vmem:[%s368_s30 + $0x8] sm:$0xff] %v428_v22  ;;  %p817_p1 = pnand %p816_p7, %p810_p4 }
  0x4f   : > { %432 = vst [vmem:[%s368_s30 + $0x10] sm:$0xff] %v429_v23 }
  0x50   : > { %820 = shalt.err (!%p817_p1)
}
  0x51   : > { %s821_s15 = scalar_lea.hbm %s1108_s8, 384  ;;  %s825_s30 = scalar_lea.hbm %s1181_s5, 768 }
  0x52   : > { %p822_p10 = scmp.ne.s32.totalorder %s1108_s8, %s821_s15  ;;  %p826_p0 = scmp.lt.s32.totalorder %s1108_s8, %s1181_s5 }
  0x53   : > { %p827_p8 = scmp.lt.s32.totalorder %s825_s30, %s821_s15 }
  0x54   : > { %p823_p13 = pnand %p822_p10, %p1014_p9 }
  0x55   : > { %p828_p2 = por %p827_p8, %p826_p0 }
  0x56   : > { %p824_p3 = pneg %p823_p13 }
  0x58   : > { %p829_p4 = pnand %p828_p2, %p824_p3 }
  0x5a   : > { %832 = shalt.err (!%p829_p4)
}
  0x5b   : > { %681 = dma.vmem_to_hbm [thread:$0]  (%p1014_p9), %s1110_s7, 384, %s1108_s8, %s447_s14   ;;  %v433_v24 = vld [vmem:[%s1085_s29] sm:$0xff] }
  0x5c   : > { %s669_s19 = sshll.u32 %s913_s24, 7  ;;  %s375_s9 = scalar_lea.vmem [#allocation8], %s664_s16 }
  0x5d   : > { %s482_s27 = sshll.u32 %s375_s9, 4  ;;  %s480_s17 = scalar_lea.hbm %s1182_s6, %s669_s19  ;;  %s483_s27 = int_to_ptr.vmem [resolvable:$true] %s482_s27 }
  0x5e   : > { %s452_s18 = scalar_lea.sflag [#allocation9], %s1071_s13  ;;  %s833_s30 = scalar_lea.vmem %s483_s27, 128 }
  0x5f   : > { %p834_p5 = scmp.ne.s32.totalorder %s483_s27, %s833_s30  ;;  %s927_s7 = smov [#allocation8]  }
  0x60   : > { %s837_s29 = sshll.u32 %s927_s7, 4  ;;  %s838_s29 = int_to_ptr.vmem [resolvable:$false] %s837_s29 }
  0x61   : > { %p835_p6 = pnand %p834_p5, %p1014_p9  ;;  %s839_s24 = scalar_lea.vmem %s838_s29, 256 }
  0x62   : > { %p840_p1 = scmp.lt.s32.totalorder %s483_s27, %s838_s29  ;;  %p841_p10 = scmp.lt.s32.totalorder %s839_s24, %s833_s30 }
  0x63   : > { %p836_p7 = pneg %p835_p6 }
  0x64   : > { %p842_p13 = por %p841_p10, %p840_p1 }
  0x66   : > { %p843_p3 = pnand %p842_p13, %p836_p7 }
  0xc1   : > { %v442_v25 = vpop.permute.xlu0 %441 }
  0xc2   : > { %v444_v26 = vadd.f32 %v442_v25, %v433_v24 }
  0xc4   : > { %445 = vst [vmem:[%s375_s9] sm:$0xff] %v444_v26 }
  0xc5   : > { %846 = shalt.err (!%p843_p3)
}
  0xc6   : > { %s847_s16 = scalar_lea.hbm %s480_s17, 128  ;;  %s851_s14 = scalar_lea.hbm %s1182_s6, 256 }
  0xc7   : > { %p848_p0 = scmp.ne.s32.totalorder %s480_s17, %s847_s16  ;;  %p852_p4 = scmp.lt.s32.totalorder %s480_s17, %s1182_s6 }
  0xc8   : > { %p853_p5 = scmp.lt.s32.totalorder %s851_s14, %s847_s16 }
  0xc9   : > { %p849_p8 = pnand %p848_p0, %p1014_p9 }
  0xca   : > { %p854_p6 = por %p853_p5, %p852_p4 }
  0xcb   : > { %p850_p2 = pneg %p849_p8 }
  0xcd   : > { %p855_p12 = pnand %p854_p6, %p850_p2 }
  0xcf   : > { %858 = shalt.err (!%p855_p12)
}
  0xd0   : > { %682 = dma.vmem_to_hbm [thread:$0]  (%p1014_p9), %s483_s27, 128, %s480_s17, %s452_s18  }
  0xd1 PF: > { %s494_s19 = sand.u32 1, %s901_s21   ;;  %p1193_p7 = scmp.ge.s32.totalorder %s921_s26, 2 }
  0xd2   : > { %s495_s9 = scalar_lea.sflag [#allocation4], %s494_s19 }
  0xd3   : > { %p693_p1 = pnand %p1193_p7, %p1021_p11 }
  0xd5   : > { %p694_p10 = pneg %p693_p1 }
  0xd7   : > { %892 = dma.done.wait (%p694_p10), %s495_s9, 384  }
  0xd8   : > { %894 = vsyncadd (%p694_p10), %s495_s9, 4294966912  ;;  %s504_s28 = scalar_lea.sflag [#allocation9], %s494_s19 }
  0xd9   : > { %896 = dma.done.wait (%p694_p10), %s504_s28, 128  }
  0xda   : > { %898 = vsyncadd (%p694_p10), %s504_s28, 4294967168  ;;  %s29_s26 = sadd.s32 1, %s921_s26   ;;  %s1194_s10 = sld [smem:[#allocation14_spill]] }
  0xdb   : > { %p26_p12 = scmp.ge.s32.totalorder %s29_s26, 4   ;;  %s1195_s21 = smov %s905_s22 }
  0xdc   : > { %s1196_s22 = smov %s909_s23  ;;  %s1197_s23 = smov %s1019_s11 }
  0xdd   : > { %s1198_s24 = smov %s917_s25  ;;  %28 = sbr.rel (!%p26_p12) target bundleno = 12 (0xc), region = 124 }
  0xe0   : > { %s1199_s25 = smov %s1194_s10 }
  0xe2   :  { %509 = vsyncpa [#allocation3], 1 }
  0xe3   :  { %511 = vsyncpa [#allocation3 + $0x1], 1 }
  0xe4   :  { %512 = vsyncpa [#allocation6], 1 }
  0xe5   :  { %514 = vsyncpa [#allocation6 + $0x1], 1 }
  0xe6   :  { %515 = vsyncpa [#allocation4], 1 }
  0xe7   :  { %517 = vsyncpa [#allocation4 + $0x1], 1 }
  0xe8   :  { %518 = vsyncpa [#allocation9], 1 }
  0xe9   :  { %520 = vsyncpa [#allocation9 + $0x1], 1 }

</bundles_post_ra>
